<compile_context>
chip_gen: v7x
topology: tpu7x:2x2x1
jax: 0.10.0
libtpu: 0.0.40
codegen_flags: <defaults>
</compile_context>

<pallas_src>
import jax
import jax.numpy as jnp
import numpy as np
from jax import lax
from jax.experimental import pallas as pl
from jax.experimental.pallas import tpu as pltpu


def agnn_kernel(x_ref, adj_ref, pool_ref,
                w1_ref, b1_ref, betas_ref,
                w2_ref, b2_ref, wg_ref, bg_ref,
                out_ref):
    x = x_ref[...]                                      # [N, 128]  (zero-padded 75->128)
    adj = adj_ref[...]                                  # [N, N]
    pool = pool_ref[...]                                # [G, N]

    bf16 = jnp.bfloat16

    # F.dropout(x) is identity in eval mode.
    # lin1 + ReLU (bf16 operands on the MXU, f32 accumulation)
    h = jnp.dot(x.astype(bf16), w1_ref[...].astype(bf16),
                preferred_element_type=jnp.float32) + b1_ref[...]
    h = jnp.maximum(h, 0.0)                             # [N, 16] f32

    neg_big = jnp.float32(-1e30)

    def agnn_prop(h, beta):
        # F.normalize(h, p=2, dim=-1) via rsqrt (EUP)
        ssq = jnp.sum(h * h, axis=-1, keepdims=True)
        hn = h * lax.rsqrt(jnp.maximum(ssq, jnp.float32(1e-24)))
        hn_b = hn.astype(bf16)
        # hn @ hn^T without materializing the transpose (trans_b matmul on MXU)
        scores = beta * lax.dot_general(
            hn_b, hn_b,
            dimension_numbers=(((1,), (1,)), ((), ())),
            preferred_element_type=jnp.float32)          # [N, N] f32
        # masked softmax over neighbors (row i = target, col j = source)
        scores = jnp.where(adj > 0.0, scores, neg_big)
        m = jnp.max(scores, axis=-1, keepdims=True)
        e = jnp.exp(scores - m)                          # masked entries underflow to 0
        denom = jnp.maximum(jnp.sum(e, axis=-1, keepdims=True), jnp.float32(1e-20))
        alpha = e * pl.reciprocal(denom, approx=True)    # EUP reciprocal
        return jnp.dot(alpha.astype(bf16), h.astype(bf16),
                       preferred_element_type=jnp.float32)   # [N, 16]

    h = agnn_prop(h, betas_ref[0])   # prop1 (requires_grad=False, beta = 1.0)
    h = agnn_prop(h, betas_ref[1])   # prop2 (requires_grad=True,  beta init 1.0)

    # F.dropout identity in eval mode.
    # lin2 folded past the sum-pool: pool(h@W2 + b2) == (pool@h)@W2 + counts*b2
    pooled_h = jnp.dot(pool.astype(bf16), h.astype(bf16),
                       preferred_element_type=jnp.float32)   # [G, 16]
    counts = jnp.sum(pool, axis=-1, keepdims=True)           # [G, 1] nodes per graph
    y = jnp.dot(pooled_h.astype(bf16), w2_ref[...].astype(bf16),
                preferred_element_type=jnp.float32) + counts * b2_ref[...]   # [G, 64]

    # gather_layer, lane-padded to 128 output columns (column 0 holds the result)
    z = jnp.dot(y.astype(bf16), wg_ref[...].astype(bf16),
                preferred_element_type=jnp.float32) + bg_ref[...]            # [G, 128]
    out_ref[...] = z


def agnn_forward(x, adj, pool, w1, b1, betas, w2, b2, wg, bg):
    """x: [B, N, F_IN], adj: [B, N, N], pool: [B, G, N]; weights shared across B."""
    B, N, f_in = x.shape
    G = pool.shape[1]
    f_pad = 128                     # lane-align the input feature dim (75 -> 128)
    out_pad = 128                   # lane-dense final store; real output is column 0

    x_p = jnp.pad(x, ((0, 0), (0, 0), (0, f_pad - f_in)))
    w1_p = jnp.pad(w1, ((0, f_pad - f_in), (0, 0)))
    wg_p = jnp.pad(wg, ((0, 0), (0, out_pad - wg.shape[1])))
    bg_p = jnp.pad(bg, ((0, 0), (0, out_pad - bg.shape[1])))

    def full_vmem(shape):
        nd = len(shape)
        return pl.BlockSpec(shape, lambda b, _nd=nd: (0,) * _nd)

    out = pl.pallas_call(
        agnn_kernel,
        out_shape=jax.ShapeDtypeStruct((B, G, out_pad), jnp.float32),
        grid=(B,),
        in_specs=[
            pl.BlockSpec((None, N, f_pad), lambda b: (b, 0, 0)),   # x (per batch item)
            pl.BlockSpec((None, N, N), lambda b: (b, 0, 0)),       # adj
            pl.BlockSpec((None, G, N), lambda b: (b, 0, 0)),       # pool
            full_vmem(w1_p.shape),                                 # W1 (shared)
            full_vmem(b1.shape),                                   # b1
            pl.BlockSpec(memory_space=pltpu.MemorySpace.SMEM),     # betas (scalars)
            full_vmem(w2.shape),                                   # W2
            full_vmem(b2.shape),                                   # b2
            full_vmem(wg_p.shape),                                 # Wg (lane-padded)
            full_vmem(bg_p.shape),                                 # bg (lane-padded)
        ],
        out_specs=pl.BlockSpec((None, G, out_pad), lambda b: (b, 0, 0)),
        compiler_params=pltpu.CompilerParams(
            dimension_semantics=("parallel",)),
    )(x_p, adj, pool, w1_p, b1, betas, w2, b2, wg_p, bg_p)
    return out[:, :, :1]


def reference_forward(x, adj, pool, w1, b1, betas, w2, b2, wg, bg):
    """Pure-JAX f32 reference with the original (un-reassociated) PyTorch math."""
    def single(xb, adjb, poolb):
        h = jnp.maximum(xb @ w1 + b1, 0.0)

        def prop(h, beta):
            nrm = jnp.sqrt(jnp.sum(h * h, axis=-1, keepdims=True))
            hn = h / jnp.maximum(nrm, 1e-12)
            s = beta * (hn @ hn.T)
            s = jnp.where(adjb > 0.0, s, -1e30)
            e = jnp.exp(s - jnp.max(s, axis=-1, keepdims=True)) * adjb
            a = e / jnp.sum(e, axis=-1, keepdims=True)
            return a @ h

        h = prop(h, betas[0])
        h = prop(h, betas[1])
        h2 = h @ w2 + b2
        return (poolb @ h2) @ wg + bg

    return jax.vmap(single)(x, adj, pool)


if __name__ == "__main__":
    B = 2            # independent graph-batches along the grid axis
    N = 8            # nodes per graph-batch
    F_IN, F_HID, F_OUT = 75, 16, 64
    G = 2            # graphs per graph-batch

    key = jax.random.PRNGKey(0)
    ks = jax.random.split(key, 8)
    x = jax.random.normal(ks[0], (B, N, F_IN), dtype=jnp.float32)
    w1 = jax.random.normal(ks[1], (F_IN, F_HID), dtype=jnp.float32) * 0.1
    b1 = jax.random.normal(ks[2], (1, F_HID), dtype=jnp.float32) * 0.1
    w2 = jax.random.normal(ks[3], (F_HID, F_OUT), dtype=jnp.float32) * 0.1
    b2 = jax.random.normal(ks[4], (1, F_OUT), dtype=jnp.float32) * 0.1
    wg = jax.random.normal(ks[5], (F_OUT, 1), dtype=jnp.float32) * 0.1
    bg = jax.random.normal(ks[6], (1, 1), dtype=jnp.float32) * 0.1
    betas = jnp.array([1.0, 1.0], dtype=jnp.float32)   # prop1 (fixed) / prop2 (init)

    adj_np = np.zeros((B, N, N), dtype=np.float32)
    pool_np = np.zeros((B, G, N), dtype=np.float32)

    # batch 0: chain over nodes 0..4 (graph 0), triangle 5..7 (graph 1)
    src0 = np.array([0, 1, 1, 2, 2, 3, 3, 4, 5, 6, 6, 7, 7, 5])
    dst0 = np.array([1, 0, 2, 1, 3, 2, 4, 3, 6, 5, 7, 6, 5, 7])
    bat0 = np.array([0, 0, 0, 0, 0, 1, 1, 1])
    # batch 1: star centered at node 0 over 0..3 (graph 0), 4-cycle 4..7 (graph 1)
    src1 = np.array([0, 1, 0, 2, 0, 3, 4, 5, 5, 6, 6, 7, 7, 4])
    dst1 = np.array([1, 0, 2, 0, 3, 0, 5, 4, 6, 5, 7, 6, 4, 7])
    bat1 = np.array([0, 0, 0, 0, 1, 1, 1, 1])

    for b, (s, d, bt) in enumerate([(src0, dst0, bat0), (src1, dst1, bat1)]):
        adj_np[b, d, s] = 1.0                          # message src -> dst: adj[target, source]
        adj_np[b, np.arange(N), np.arange(N)] = 1.0    # self loops (AGNNConv default)
        pool_np[b, bt, np.arange(N)] = 1.0

    adj = jnp.asarray(adj_np)
    pool = jnp.asarray(pool_np)

    out = agnn_forward(x, adj, pool, w1, b1, betas, w2, b2, wg, bg)
    out = jax.block_until_ready(out)

    ref = reference_forward(x, adj, pool, w1, b1, betas, w2, b2, wg, bg)
    assert out.shape == (B, G, 1)
    # bf16 MXU operands + approx reciprocal give ~1e-2 relative deviation vs. pure f32.
    assert np.allclose(np.asarray(out), np.asarray(ref), atol=2e-2, rtol=2e-2), (
        np.asarray(out), np.asarray(ref))
    assert not np.any(np.isnan(np.asarray(out)))

    print("KERNEL_OK")
</pallas_src>

<mosaic_0001>
module attributes {stable_mosaic.version = 11 : i64} {
  func.func @agnn_kernel(%arg0: i32, %arg1: memref<1x8x128xf32, #tpu.memory_space<vmem>>, %arg2: memref<1x8x8xf32, #tpu.memory_space<vmem>>, %arg3: memref<1x2x8xf32, #tpu.memory_space<vmem>>, %arg4: memref<128x16xf32, #tpu.memory_space<vmem>>, %arg5: memref<1x16xf32, #tpu.memory_space<vmem>>, %arg6: memref<2xf32, #tpu.memory_space<smem>>, %arg7: memref<16x64xf32, #tpu.memory_space<vmem>>, %arg8: memref<1x64xf32, #tpu.memory_space<vmem>>, %arg9: memref<64x128xf32, #tpu.memory_space<vmem>>, %arg10: memref<1x128xf32, #tpu.memory_space<vmem>>, %arg11: memref<1x2x128xf32, #tpu.memory_space<vmem>>) attributes {dimension_semantics = [#tpu.dimension_semantics<parallel>], iteration_bounds = array<i64: 2>, scalar_prefetch = 0 : i64, scratch_operands = 0 : i64, tpu.core_type = #tpu.core_type<tc>, window_params = [{transform_indices = @transform_0, window_bounds = array<i64: 1, 8, 128>}, {transform_indices = @transform_1, window_bounds = array<i64: 1, 8, 8>}, {transform_indices = @transform_2, window_bounds = array<i64: 1, 2, 8>}, {pipeline_mode = #tpu.pipeline_mode<synchronous>, transform_indices = @transform_3, window_bounds = array<i64: 128, 16>}, {pipeline_mode = #tpu.pipeline_mode<synchronous>, transform_indices = @transform_4, window_bounds = array<i64: 1, 16>}, {transform_indices = @transform_5, window_bounds = array<i64: 2>}, {pipeline_mode = #tpu.pipeline_mode<synchronous>, transform_indices = @transform_6, window_bounds = array<i64: 16, 64>}, {pipeline_mode = #tpu.pipeline_mode<synchronous>, transform_indices = @transform_7, window_bounds = array<i64: 1, 64>}, {pipeline_mode = #tpu.pipeline_mode<synchronous>, transform_indices = @transform_8, window_bounds = array<i64: 64, 128>}, {pipeline_mode = #tpu.pipeline_mode<synchronous>, transform_indices = @transform_9, window_bounds = array<i64: 1, 128>}, {transform_indices = @transform_10, window_bounds = array<i64: 1, 2, 128>}]} {
    %c0 = arith.constant 0 : index
    %c0_0 = arith.constant 0 : index
    %c0_1 = arith.constant 0 : index
    %0 = vector.load %arg1[%c0, %c0_0, %c0_1] : memref<1x8x128xf32, #tpu.memory_space<vmem>>, vector<1x8x128xf32>
    %1 = vector.shape_cast %0 : vector<1x8x128xf32> to vector<8x128xf32>
    %c0_2 = arith.constant 0 : index
    %c0_3 = arith.constant 0 : index
    %c0_4 = arith.constant 0 : index
    %2 = vector.load %arg2[%c0_2, %c0_3, %c0_4] : memref<1x8x8xf32, #tpu.memory_space<vmem>>, vector<1x8x8xf32>
    %3 = vector.shape_cast %2 : vector<1x8x8xf32> to vector<8x8xf32>
    %c0_5 = arith.constant 0 : index
    %c0_6 = arith.constant 0 : index
    %c0_7 = arith.constant 0 : index
    %4 = vector.load %arg3[%c0_5, %c0_6, %c0_7] : memref<1x2x8xf32, #tpu.memory_space<vmem>>, vector<1x2x8xf32>
    %5 = vector.shape_cast %4 : vector<1x2x8xf32> to vector<2x8xf32>
    %6 = arith.truncf %1 : vector<8x128xf32> to vector<8x128xbf16>
    %c0_8 = arith.constant 0 : index
    %c0_9 = arith.constant 0 : index
    %7 = vector.load %arg4[%c0_8, %c0_9] : memref<128x16xf32, #tpu.memory_space<vmem>>, vector<128x16xf32>
    %8 = arith.truncf %7 : vector<128x16xf32> to vector<128x16xbf16>
    %cst = arith.constant dense<0.000000e+00> : vector<8x16xf32>
    %9 = tpu.matmul %6, %8, %cst {dimension_numbers = #tpu.dot_dimension_numbers<[1], [0], [0], [1], [0, 0, 1, 1], [], []>} : vector<8x128xbf16>, vector<128x16xbf16>, vector<8x16xf32> -> vector<8x16xf32>
    %c0_10 = arith.constant 0 : index
    %c0_11 = arith.constant 0 : index
    %10 = vector.load %arg5[%c0_10, %c0_11] : memref<1x16xf32, #tpu.memory_space<vmem>>, vector<1x16xf32>
    %11 = vector.broadcast %10 : vector<1x16xf32> to vector<8x16xf32>
    %12 = arith.addf %9, %11 : vector<8x16xf32>
    %cst_12 = arith.constant 0.000000e+00 : f32
    %13 = vector.broadcast %cst_12 : f32 to vector<8x16xf32>
    %14 = arith.maximumf %12, %13 : vector<8x16xf32>
    %c0_13 = arith.constant 0 : index
    %15 = memref.load %arg6[%c0_13] : memref<2xf32, #tpu.memory_space<smem>>
    %16 = arith.mulf %14, %14 : vector<8x16xf32>
    %cst_14 = arith.constant dense<0.000000e+00> : vector<8xf32>
    %17 = vector.multi_reduction <add>, %16, %cst_14 [1] : vector<8x16xf32> to vector<8xf32>
    %18 = vector.shape_cast %17 : vector<8xf32> to vector<8x1xf32>
    %cst_15 = arith.constant 1.000000e-24 : f32
    %19 = vector.broadcast %cst_15 : f32 to vector<8x1xf32>
    %20 = arith.maximumf %18, %19 : vector<8x1xf32>
    %21 = math.rsqrt %20 : vector<8x1xf32>
    %22 = vector.broadcast %21 : vector<8x1xf32> to vector<8x16xf32>
    %23 = arith.mulf %14, %22 : vector<8x16xf32>
    %24 = arith.truncf %23 : vector<8x16xf32> to vector<8x16xbf16>
    %cst_16 = arith.constant dense<0.000000e+00> : vector<8x8xf32>
    %25 = tpu.matmul %24, %24, %cst_16 {dimension_numbers = #tpu.dot_dimension_numbers<[1], [1], [0], [0], [0, 0, 1, 0], [], []>} : vector<8x16xbf16>, vector<8x16xbf16>, vector<8x8xf32> -> vector<8x8xf32>
    %26 = vector.broadcast %15 : f32 to vector<8x8xf32>
    %27 = arith.mulf %26, %25 : vector<8x8xf32>
    %cst_17 = arith.constant 0.000000e+00 : f32
    %28 = vector.broadcast %cst_17 : f32 to vector<8x8xf32>
    %29 = arith.cmpf ogt, %3, %28 : vector<8x8xf32>
    %cst_18 = arith.constant -1.000000e+30 : f32
    %30 = vector.broadcast %cst_18 : f32 to vector<8x8xf32>
    %31 = arith.select %29, %27, %30 : vector<8x8xi1>, vector<8x8xf32>
    %cst_19 = arith.constant dense<0xFF800000> : vector<8xf32>
    %32 = vector.multi_reduction <maximumf>, %31, %cst_19 [1] : vector<8x8xf32> to vector<8xf32>
    %33 = vector.shape_cast %32 : vector<8xf32> to vector<8x1xf32>
    %34 = vector.broadcast %33 : vector<8x1xf32> to vector<8x8xf32>
    %35 = arith.subf %31, %34 : vector<8x8xf32>
    %36 = math.exp %35 : vector<8x8xf32>
    %cst_20 = arith.constant dense<0.000000e+00> : vector<8xf32>
    %37 = vector.multi_reduction <add>, %36, %cst_20 [1] : vector<8x8xf32> to vector<8xf32>
    %38 = vector.shape_cast %37 : vector<8xf32> to vector<8x1xf32>
    %cst_21 = arith.constant 9.99999968E-21 : f32
    %39 = vector.broadcast %cst_21 : f32 to vector<8x1xf32>
    %40 = arith.maximumf %38, %39 : vector<8x1xf32>
    %41 = tpu.reciprocal %40 {approx = true} : vector<8x1xf32> -> vector<8x1xf32>
    %42 = vector.broadcast %41 : vector<8x1xf32> to vector<8x8xf32>
    %43 = arith.mulf %36, %42 : vector<8x8xf32>
    %44 = arith.truncf %43 : vector<8x8xf32> to vector<8x8xbf16>
    %45 = arith.truncf %14 : vector<8x16xf32> to vector<8x16xbf16>
    %cst_22 = arith.constant dense<0.000000e+00> : vector<8x16xf32>
    %46 = tpu.matmul %44, %45, %cst_22 {dimension_numbers = #tpu.dot_dimension_numbers<[1], [0], [0], [1], [0, 0, 1, 1], [], []>} : vector<8x8xbf16>, vector<8x16xbf16>, vector<8x16xf32> -> vector<8x16xf32>
    %c1 = arith.constant 1 : index
    %47 = memref.load %arg6[%c1] : memref<2xf32, #tpu.memory_space<smem>>
    %48 = arith.mulf %46, %46 : vector<8x16xf32>
    %cst_23 = arith.constant dense<0.000000e+00> : vector<8xf32>
    %49 = vector.multi_reduction <add>, %48, %cst_23 [1] : vector<8x16xf32> to vector<8xf32>
    %50 = vector.shape_cast %49 : vector<8xf32> to vector<8x1xf32>
    %cst_24 = arith.constant 1.000000e-24 : f32
    %51 = vector.broadcast %cst_24 : f32 to vector<8x1xf32>
    %52 = arith.maximumf %50, %51 : vector<8x1xf32>
    %53 = math.rsqrt %52 : vector<8x1xf32>
    %54 = vector.broadcast %53 : vector<8x1xf32> to vector<8x16xf32>
    %55 = arith.mulf %46, %54 : vector<8x16xf32>
    %56 = arith.truncf %55 : vector<8x16xf32> to vector<8x16xbf16>
    %cst_25 = arith.constant dense<0.000000e+00> : vector<8x8xf32>
    %57 = tpu.matmul %56, %56, %cst_25 {dimension_numbers = #tpu.dot_dimension_numbers<[1], [1], [0], [0], [0, 0, 1, 0], [], []>} : vector<8x16xbf16>, vector<8x16xbf16>, vector<8x8xf32> -> vector<8x8xf32>
    %58 = vector.broadcast %47 : f32 to vector<8x8xf32>
    %59 = arith.mulf %58, %57 : vector<8x8xf32>
    %cst_26 = arith.constant 0.000000e+00 : f32
    %60 = vector.broadcast %cst_26 : f32 to vector<8x8xf32>
    %61 = arith.cmpf ogt, %3, %60 : vector<8x8xf32>
    %cst_27 = arith.constant -1.000000e+30 : f32
    %62 = vector.broadcast %cst_27 : f32 to vector<8x8xf32>
    %63 = arith.select %61, %59, %62 : vector<8x8xi1>, vector<8x8xf32>
    %cst_28 = arith.constant dense<0xFF800000> : vector<8xf32>
    %64 = vector.multi_reduction <maximumf>, %63, %cst_28 [1] : vector<8x8xf32> to vector<8xf32>
    %65 = vector.shape_cast %64 : vector<8xf32> to vector<8x1xf32>
    %66 = vector.broadcast %65 : vector<8x1xf32> to vector<8x8xf32>
    %67 = arith.subf %63, %66 : vector<8x8xf32>
    %68 = math.exp %67 : vector<8x8xf32>
    %cst_29 = arith.constant dense<0.000000e+00> : vector<8xf32>
    %69 = vector.multi_reduction <add>, %68, %cst_29 [1] : vector<8x8xf32> to vector<8xf32>
    %70 = vector.shape_cast %69 : vector<8xf32> to vector<8x1xf32>
    %cst_30 = arith.constant 9.99999968E-21 : f32
    %71 = vector.broadcast %cst_30 : f32 to vector<8x1xf32>
    %72 = arith.maximumf %70, %71 : vector<8x1xf32>
    %73 = tpu.reciprocal %72 {approx = true} : vector<8x1xf32> -> vector<8x1xf32>
    %74 = vector.broadcast %73 : vector<8x1xf32> to vector<8x8xf32>
    %75 = arith.mulf %68, %74 : vector<8x8xf32>
    %76 = arith.truncf %75 : vector<8x8xf32> to vector<8x8xbf16>
    %77 = arith.truncf %46 : vector<8x16xf32> to vector<8x16xbf16>
    %cst_31 = arith.constant dense<0.000000e+00> : vector<8x16xf32>
    %78 = tpu.matmul %76, %77, %cst_31 {dimension_numbers = #tpu.dot_dimension_numbers<[1], [0], [0], [1], [0, 0, 1, 1], [], []>} : vector<8x8xbf16>, vector<8x16xbf16>, vector<8x16xf32> -> vector<8x16xf32>
    %79 = arith.truncf %5 : vector<2x8xf32> to vector<2x8xbf16>
    %80 = arith.truncf %78 : vector<8x16xf32> to vector<8x16xbf16>
    %cst_32 = arith.constant dense<0.000000e+00> : vector<2x16xf32>
    %81 = tpu.matmul %79, %80, %cst_32 {dimension_numbers = #tpu.dot_dimension_numbers<[1], [0], [0], [1], [0, 0, 1, 1], [], []>} : vector<2x8xbf16>, vector<8x16xbf16>, vector<2x16xf32> -> vector<2x16xf32>
    %cst_33 = arith.constant dense<0.000000e+00> : vector<2xf32>
    %82 = vector.multi_reduction <add>, %5, %cst_33 [1] : vector<2x8xf32> to vector<2xf32>
    %83 = vector.shape_cast %82 : vector<2xf32> to vector<2x1xf32>
    %84 = arith.truncf %81 : vector<2x16xf32> to vector<2x16xbf16>
    %c0_34 = arith.constant 0 : index
    %c0_35 = arith.constant 0 : index
    %85 = vector.load %arg7[%c0_34, %c0_35] : memref<16x64xf32, #tpu.memory_space<vmem>>, vector<16x64xf32>
    %86 = arith.truncf %85 : vector<16x64xf32> to vector<16x64xbf16>
    %cst_36 = arith.constant dense<0.000000e+00> : vector<2x64xf32>
    %87 = tpu.matmul %84, %86, %cst_36 {dimension_numbers = #tpu.dot_dimension_numbers<[1], [0], [0], [1], [0, 0, 1, 1], [], []>} : vector<2x16xbf16>, vector<16x64xbf16>, vector<2x64xf32> -> vector<2x64xf32>
    %c0_37 = arith.constant 0 : index
    %c0_38 = arith.constant 0 : index
    %88 = vector.load %arg8[%c0_37, %c0_38] : memref<1x64xf32, #tpu.memory_space<vmem>>, vector<1x64xf32>
    %89 = vector.broadcast %83 : vector<2x1xf32> to vector<2x64xf32>
    %90 = vector.broadcast %88 : vector<1x64xf32> to vector<2x64xf32>
    %91 = arith.mulf %89, %90 : vector<2x64xf32>
    %92 = arith.addf %87, %91 : vector<2x64xf32>
    %93 = arith.truncf %92 : vector<2x64xf32> to vector<2x64xbf16>
    %c0_39 = arith.constant 0 : index
    %c0_40 = arith.constant 0 : index
    %94 = vector.load %arg9[%c0_39, %c0_40] : memref<64x128xf32, #tpu.memory_space<vmem>>, vector<64x128xf32>
    %95 = arith.truncf %94 : vector<64x128xf32> to vector<64x128xbf16>
    %cst_41 = arith.constant dense<0.000000e+00> : vector<2x128xf32>
    %96 = tpu.matmul %93, %95, %cst_41 {dimension_numbers = #tpu.dot_dimension_numbers<[1], [0], [0], [1], [0, 0, 1, 1], [], []>} : vector<2x64xbf16>, vector<64x128xbf16>, vector<2x128xf32> -> vector<2x128xf32>
    %c0_42 = arith.constant 0 : index
    %c0_43 = arith.constant 0 : index
    %97 = vector.load %arg10[%c0_42, %c0_43] : memref<1x128xf32, #tpu.memory_space<vmem>>, vector<1x128xf32>
    %98 = vector.broadcast %97 : vector<1x128xf32> to vector<2x128xf32>
    %99 = arith.addf %96, %98 : vector<2x128xf32>
    %c0_44 = arith.constant 0 : index
    %c0_45 = arith.constant 0 : index
    %c0_46 = arith.constant 0 : index
    %100 = vector.load %arg11[%c0_44, %c0_45, %c0_46] : memref<1x2x128xf32, #tpu.memory_space<vmem>>, vector<1x2x128xf32>
    %101 = vector.shape_cast %100 : vector<1x2x128xf32> to vector<2x128xf32>
    %102 = vector.shape_cast %99 : vector<2x128xf32> to vector<1x2x128xf32>
    tpu.vector_store %arg11[%c0_44, %c0_45, %c0_46], %102 {strides = array<i32>} : memref<1x2x128xf32, #tpu.memory_space<vmem>>, vector<1x2x128xf32>,
    return
  }
  func.func @transform_0(%arg0: i32) -> (i32, i32, i32) {
    %c0_i32 = arith.constant 0 : i32
    %c0_i32_0 = arith.constant 0 : i32
    %c0_i32_1 = arith.constant 0 : i32
    return %arg0, %c0_i32, %c0_i32_0 : i32, i32, i32
  }
  func.func @transform_1(%arg0: i32) -> (i32, i32, i32) {
    %c0_i32 = arith.constant 0 : i32
    %c0_i32_0 = arith.constant 0 : i32
    %c0_i32_1 = arith.constant 0 : i32
    return %arg0, %c0_i32, %c0_i32_0 : i32, i32, i32
  }
  func.func @transform_2(%arg0: i32) -> (i32, i32, i32) {
    %c0_i32 = arith.constant 0 : i32
    %c0_i32_0 = arith.constant 0 : i32
    %c0_i32_1 = arith.constant 0 : i32
    return %arg0, %c0_i32, %c0_i32_0 : i32, i32, i32
  }
  func.func @transform_3(%arg0: i32) -> (i32, i32) {
    %c0_i32 = arith.constant 0 : i32
    %c0_i32_0 = arith.constant 0 : i32
    %c0_i32_1 = arith.constant 0 : i32
    return %c0_i32, %c0_i32_0 : i32, i32
  }
  func.func @transform_4(%arg0: i32) -> (i32, i32) {
    %c0_i32 = arith.constant 0 : i32
    %c0_i32_0 = arith.constant 0 : i32
    %c0_i32_1 = arith.constant 0 : i32
    return %c0_i32, %c0_i32_0 : i32, i32
  }
  func.func @transform_5(%arg0: i32) -> i32 {
    %c0_i32 = arith.constant 0 : i32
    %c0_i32_0 = arith.constant 0 : i32
    return %c0_i32 : i32
  }
  func.func @transform_6(%arg0: i32) -> (i32, i32) {
    %c0_i32 = arith.constant 0 : i32
    %c0_i32_0 = arith.constant 0 : i32
    %c0_i32_1 = arith.constant 0 : i32
    return %c0_i32, %c0_i32_0 : i32, i32
  }
  func.func @transform_7(%arg0: i32) -> (i32, i32) {
    %c0_i32 = arith.constant 0 : i32
    %c0_i32_0 = arith.constant 0 : i32
    %c0_i32_1 = arith.constant 0 : i32
    return %c0_i32, %c0_i32_0 : i32, i32
  }
  func.func @transform_8(%arg0: i32) -> (i32, i32) {
    %c0_i32 = arith.constant 0 : i32
    %c0_i32_0 = arith.constant 0 : i32
    %c0_i32_1 = arith.constant 0 : i32
    return %c0_i32, %c0_i32_0 : i32, i32
  }
  func.func @transform_9(%arg0: i32) -> (i32, i32) {
    %c0_i32 = arith.constant 0 : i32
    %c0_i32_0 = arith.constant 0 : i32
    %c0_i32_1 = arith.constant 0 : i32
    return %c0_i32, %c0_i32_0 : i32, i32
  }
  func.func @transform_10(%arg0: i32) -> (i32, i32, i32) {
    %c0_i32 = arith.constant 0 : i32
    %c0_i32_0 = arith.constant 0 : i32
    %c0_i32_1 = arith.constant 0 : i32
    return %arg0, %c0_i32, %c0_i32_0 : i32, i32, i32
  }
}

</mosaic_0001>

<bundles_post_ra>
// kernel: tpu_custom_call.1
= control target key start
LH: loop header
LB: loop body
LE: loop exit
PB: predicated region body
PF: predicated region fallthrough
CT: control target
= control target key end

     0   :  { %15 = vsyncpa [#allocation4], 0  ;;  %s1592_s0 = inlined_call_operand.vmem [shape: f32[2,8,128], index: 0, kind: input, shape index: {}]   ;;  %s1593_s1 = inlined_call_operand.vmem [shape: f32[2,8,8], index: 1, kind: input, shape index: {}]   ;;  %s1594_s2 = inlined_call_operand.vmem [shape: f32[2,2,8], index: 2, kind: input, shape index: {}]   ;;  %s1595_s3 = inlined_call_operand.vmem [shape: f32[128,16], index: 3, kind: input, shape index: {}]   ;;  %s1596_s4 = inlined_call_operand.vmem [shape: f32[1,16], index: 4, kind: input, shape index: {}]   ;;  %s1597_s5 = inlined_call_operand.vmem [shape: f32[2], index: 5, kind: input, shape index: {}]   ;;  %s1598_s6 = inlined_call_operand.vmem [shape: f32[16,64], index: 6, kind: input, shape index: {}]   ;;  %s1599_s7 = inlined_call_operand.vmem [shape: f32[1,64], index: 7, kind: input, shape index: {}]   ;;  %s1600_s8 = inlined_call_operand.vmem [shape: f32[64,128], index: 8, kind: input, shape index: {}]   ;;  %s1601_s9 = inlined_call_operand.vmem [shape: f32[1,128], index: 9, kind: input, shape index: {}]   ;;  %s1602_s10 = inlined_call_operand.hbm [shape: f32[2,2,128], index: 10, kind: output, shape index: {}]  }
   0x1   :  { %16 = vsyncpa [#allocation3], 0 }
   0x2   :  { %18 = vsyncpa [#allocation3 + $0x1], 0  ;;  %s1320_s13 = smov 0   ;;  %s1322_s14 = smov 0  }
   0x3   :  { %s1324_s15 = smov 0   ;;  %s1326_s16 = smov 0  }
   0x4 LB: > { %s1341_s17 = sadd.s32 4294967295, %s1259_s16   ;;  %s995_s18 = sadd.s32 4294967294, %s1259_s16   ;;  %s1259_s16 = sphi %s1326_s16, %s1609_s16   ;;  %s1255_s15 = sphi %s1324_s15, %s1608_s15   ;;  %s1251_s14 = sphi %s1322_s14, %s1607_s14   ;;  %s1247_s13 = sphi %s1320_s13, %s1606_s13  }
   0x5   : > { %s1345_s19 = sadd.s32 1, %s1259_s16   ;;  %s256_s20 = sadd.s32 1, %s1255_s15 }
   0x6   : > { %s253_s21 = ssub.s32 %s1259_s16, %s1345_s19  ;;  %p266_p0 = scmp.ne.s32.totalorder %s1255_s15, %s1251_s14 }
   0x7   : > { %p254_p1 = scmp.eq.s32.totalorder %s253_s21, 0  ;;  %p267_p2 = scmp.eq.s32.totalorder %s1341_s17, 1 }
   0x8   : > { %p272_p3 = scmp.ne.s32.totalorder %s1251_s14, %s1247_s13  ;;  %p273_p4 = scmp.eq.s32.totalorder %s995_s18, 1 }
   0x9   : > { %s1356_s22 = scalar_select %p254_p1, %s1255_s15, %s256_s20  }
   0xa   : > { %p1358_p5 = por %p267_p2, %p266_p0  ;;  %p1362_p6 = por %p273_p4, %p272_p3 }
   0xb   : > { %p996_p7 = scmp.ge.s32.totalorder %s1259_s16, 1  ;;  %p280_p8 = scmp.lt.s32.totalorder %s1259_s16, 3 }
   0xc   : > { %p1128_p9 = scmp.eq.s32.totalorder %s1341_s17, 0  ;;  %s299_s28 = sshll.u32 %s1597_s5, 4  ;;  %s300_s28 = int_to_ptr.vmem [resolvable:$true] %s299_s28 }
   0xd   : > { %p1369_p10 = pnand %p996_p7, %p280_p8  ;;  %s1178_s29 = scalar_lea.vmem %s300_s28, 16 }
   0xe   : > { %p1179_p13 = scmp.ne.s32.totalorder %s300_s28, %s1178_s29  ;;  %p1186_p3 = scmp.lt.s32.totalorder %s300_s28, %s300_s28 }
   0xf   : > { %p1120_p11 = pneg %p1369_p10  ;;  %p1187_p4 = scmp.lt.s32.totalorder %s1178_s29, %s1178_s29 }
  0x11   : > { %p1121_p12 = pnand %p1128_p9, %p1120_p11  ;;  %p1188_p7 = por %p1187_p4, %p1186_p3 }
  0x13   : > { %p1180_p0 = pneg %p1121_p12 }
  0x15   : > { %p1181_p1 = pnand %p1180_p0, %p1179_p13 }
  0x17   : > { %p1182_p2 = pneg %p1181_p1 }
  0x19   : > { %p1189_p8 = pnand %p1188_p7, %p1182_p2 }
  0x1b   : > { %1192 = shalt.err (!%p1189_p8)
}
  0x1c   : > { %s1261_s30 = smov [#allocation2]   ;;  %345 = sbr.rel (%p1369_p10) target bundleno = 2782 (0xade), region = 60 }
  0x1d   : > { %1123 = dma.vmem_to_smem (!%p1121_p12), %s300_s28, 16, %s1261_s30, [#allocation4]  }
  0x23   : > { %1238 = dma.done.wait (%p1128_p9), [#allocation4], 16  }
  0x24   : > { %1240 = vsyncadd (%p1128_p9), [#allocation4], 4294967280 }
  0x25   : > { %351 = sfence }
  0x26   : > { %v408_v0 = vld [vmem:[%s1595_s3] sm:$0xff]  ;;  %v409_v1 = vld [vmem:[%s1595_s3 + $0x8] sm:$0xff]  ;;  %v410_v2 = vld [vmem:[%s1595_s3 + $0x10] sm:$0xff]  ;;  %v1262_v3 = vmov 0.0   ;;  %vm1263_vm0 = vmmov 0   ;;  %p391_p9 = scmp.lt.s32.totalorder %s1341_s17, 1 }
  0x27   : > { %1046 = vmatprep.subr.bf16.mxu0 %v1262_v3  ;;  %v424_v4 = vpack.c.bf16 %v409_v1, %v408_v0  ;;  %v411_v5 = vld [vmem:[%s1595_s3 + $0x18] sm:$0xff]  ;;  %1062 = vmatprep.mubr.msk.bf16.mxu0 %vm1263_vm0, %v1262_v3  ;;  %v412_v7 = vld [vmem:[%s1595_s3 + $0x20] sm:$0xff]  ;;  %v413_v8 = vld [vmem:[%s1595_s3 + $0x28] sm:$0xff]  ;;  %vm482_vm1 = vcmask 130048   ;;  %vm555_vm2 = vcmask 1043456   ;;  %s480_s28 = sld [smem:[#allocation2]] }
  0x28   : > { %1066 = vmatprep.subr.bf16.mxu1 %v1262_v3  ;;  %1068 = vmatprep.mubr.msk.bf16.mxu1 %vm1263_vm0, %v1262_v3  ;;  %v425_v6 = vpack.c.bf16 %v411_v5, %v410_v2  ;;  %v426_v9 = vpack.c.bf16 %v413_v8, %v412_v7  ;;  %v414_v10 = vld [vmem:[%s1595_s3 + $0x30] sm:$0xff]  ;;  %v415_v11 = vld [vmem:[%s1595_s3 + $0x38] sm:$0xff]  ;;  %v416_v13 = vld [vmem:[%s1595_s3 + $0x40] sm:$0xff]  ;;  %s1434_s18 = scalar_select %p391_p9, %s1341_s17, 1  ;;  %vm537_vm4 = vcmask 64512   ;;  %vm762_vm5 = vcmask 58368  }
  0x29   : > { %1047 = vmatpush3.bf16.msra.mxu0 %v424_v4  ;;  %v427_v12 = vpack.c.bf16 %v415_v11, %v414_v10  ;;  %v417_v14 = vld [vmem:[%s1595_s3 + $0x48] sm:$0xff]  ;;  %v418_v16 = vld [vmem:[%s1595_s3 + $0x50] sm:$0xff]  ;;  %v419_v17 = vld [vmem:[%s1595_s3 + $0x58] sm:$0xff]  ;;  %vm841_vm6 = vcmask 523264   ;;  %s388_s25 = sand.u32 1, %s1251_s14  }
  0x2a   : > { %1048 = vmatprep.subr.bf16.mxu0 %v1262_v3  ;;  %v428_v15 = vpack.c.bf16 %v417_v14, %v416_v13  ;;  %v429_v18 = vpack.c.bf16 %v419_v17, %v418_v16  ;;  %v420_v19 = vld [vmem:[%s1595_s3 + $0x60] sm:$0xff]  ;;  %v421_v20 = vld [vmem:[%s1595_s3 + $0x68] sm:$0xff]  ;;  %s1002_s27 = sshll.u32 %s1434_s18, 3  ;;  %v422_v22 = vld [vmem:[%s1595_s3 + $0x70] sm:$0xff]  ;;  %s1004_s12 = sshll.u32 %s1434_s18, 1 }
  0x2b   : > { %v430_v21 = vpack.c.bf16 %v421_v20, %v420_v19  ;;  %v423_v23 = vld [vmem:[%s1595_s3 + $0x78] sm:$0xff]  ;;  %s394_s21 = scalar_lea.vmem %s1592_s0, %s1002_s27  ;;  %v1005_v27 = vld [vmem:[%s1596_s4] ss:$0 sm:$0xff]  ;;  %s398_s11 = scalar_lea.vmem %s1593_s1, %s1002_s27 }
  0x2c   : > { %v431_v24 = vpack.c.bf16 %v423_v23, %v422_v22  ;;  %v404_v25 = vld [vmem:[%s394_s21] sm:$0xff]  ;;  %s1008_s27 = sld [smem:[#allocation2 + $0x1]]  ;;  %s402_s26 = scalar_lea.vmem %s1594_s2, %s1004_s12 }
  0x2d   : > { %1049 = vmatpush3.bf16.msra.mxu0 %v425_v6  ;;  %v407_v26 = vpack.c.bf16 %v404_v25, %v404_v25  ;;  %v405_v44 = vld [vmem:[%s398_s11] sm:$0xff]  ;;  %v533_v45 = vstv %s480_s28  ;;  %s1001_s28 = sshll.u32 %s388_s25, 1  ;;  %s1017_s18 = sshll.u32 %s1341_s17, 5 }
  0x2e   : > { %1050 = vmatprep.subr.bf16.mxu0 %v1262_v3  ;;  %vm535_vm3 = vcmp.gt.f32.partialorder %v405_v44, 0.0  ;;  %v823_v44 = vld [vmem:[%s1600_s8 + $0x8] sm:$0xff]  ;;  %s390_s11 = scalar_lea.vmem [#allocation5], %s1001_s28  ;;  %s1550_s21 = scalar_lea.hbm %s1602_s10, %s1017_s18 }
  0x2f   : > { %s1264_s28 = smov [#allocation5]  }
  0x30   : > { %s1197_s29 = sshll.u32 %s1264_s28, 4  ;;  %s1198_s29 = int_to_ptr.vmem [resolvable:$false] %s1197_s29 }
  0x31   : > { %1051 = vmatpush3.bf16.msra.mxu0 %v426_v9  ;;  %s1199_s30 = scalar_lea.vmem %s1198_s29, 64 }
  0x32   : > { %1052 = vmatprep.subr.bf16.mxu0 %v1262_v3  ;;  %v651_v14 = vstv %s1008_s27  ;;  %s900_s27 = sshll.u32 %s390_s11, 4  ;;  %s1552_s27 = int_to_ptr.vmem [resolvable:$true] %s900_s27 }
  0x33   : > { %s1193_s17 = scalar_lea.vmem %s1552_s27, 32  ;;  %p1200_p13 = scmp.lt.s32.totalorder %s1552_s27, %s1198_s29 }
  0x34   : > { %p1194_p10 = scmp.ne.s32.totalorder %s1552_s27, %s1193_s17  ;;  %p1201_p0 = scmp.lt.s32.totalorder %s1199_s30, %s1193_s17 }
  0x35   : > { %1053 = vmatpush3.bf16.msra.mxu0 %v427_v12 }
  0x36   : > { %1054 = vmatprep.subr.bf16.mxu0 %v1262_v3  ;;  %p1195_p11 = pnand %p1194_p10, %p1358_p5  ;;  %p1202_p1 = por %p1201_p0, %p1200_p13 }
  0x38   : > { %p1196_p12 = pneg %p1195_p11 }
  0x39   : > { %1055 = vmatpush3.bf16.msra.mxu0 %v428_v15 }
  0x3a   : > { %1056 = vmatprep.subr.bf16.mxu0 %v1262_v3  ;;  %p1203_p2 = pnand %p1202_p1, %p1196_p12 }
  0x3d   : > { %1057 = vmatpush3.bf16.msra.mxu0 %v429_v18 }
  0x3e   : > { %1058 = vmatprep.subr.bf16.mxu0 %v1262_v3 }
  0x41   : > { %1059 = vmatpush3.bf16.msra.mxu0 %v430_v21 }
  0x42   : > { %1060 = vmatprep.subr.bf16.mxu0 %v1262_v3 }
  0x45   : > { %1061 = vmatpush3.bf16.msra.mxu0 %v431_v24 }
  0x46   : > { %1102 = vmatprep.subr.bf16.mxu0 %v1262_v3 }
  0x48   : > { %1063 = vmatmul.mubr.bf16.vlgmr.msra.gmra.mrb[0].mxu0 %v407_v26 }
  0x49   : > { %1110 = vmatprep.mubr.msk.bf16.mxu0 %vm1263_vm0, %v1262_v3 }
 0x11b   : > { %v473_v28 = vpop.f32.mrb[0].mxu0 }
 0x11c   : > { %v474_v29 = vadd.f32 %v1005_v27, %v473_v28  ;;  %v1064_v30 = vpop.f32.mrb[1].mxu0 }
 0x11d   : > { %v476_v31 = vpop.f32.mrb[2].mxu0 }
 0x11e   : > { %v479_v32 = vmax.f32 %v474_v29, 0.0  ;;  %v1065_v33 = vpop.f32.mrb[3].mxu0 }
 0x120   : > { %v481_v34 = vmul.f32 %v479_v32, %v479_v32  ;;  %v551_v42 = vpack.c.bf16 %v479_v32, %v479_v32 }
 0x122   : > { %v483_v35 = vsel %vm482_vm1, %v481_v34, 0.0  ;;  %v557_v43 = vsel %vm555_vm2, %v551_v42, 0 }
 0x123   : > { %484 = vadd.xlane.f32.xlu0 %v483_v35 }
 0x1b0   : > { %v485_v36 = vpop.xlane.xlu0 %484 }
 0x1b1   : > { %v486_v37 = vmax.f32 %v485_v36, 1e-24  ;;  %v767_v36 = vld [vmem:[%s1598_s6] sm:$0xff] }
 0x1b3   : > { %1166 = vrsqrt.f32 %v486_v37  ;;  %v768_v37 = vld [vmem:[%s1598_s6 + $0x8] sm:$0xff] }
 0x1b4   : > { %v769_v42 = vpack.c.bf16 %v768_v37, %v767_v36 }
 0x1bd   : > { %v1167_v38 = vpop.eup %1166 }
 0x1be   : > { %v488_v39 = vmul.f32 %v1167_v38, %v479_v32  ;;  %v406_v32 = vld [vmem:[%s402_s26] sm:$0x3]  ;;  %s887_s26 = scalar_lea.sflag [#allocation3], %s388_s25 }
 0x1c0   : > { %v489_v40 = vpack.c.bf16 %v488_v39, %v488_v39  ;;  %v714_v39 = vpack.c.bf16 %v406_v32, %v406_v32 }
 0x1c2   : > { %v491_v41 = vsel %vm482_vm1, %v489_v40, 0 }
 0x1c3   : > { %1067 = vmatpush3.bf16.xpose.msra.mxu1 %v491_v41 }
 0x1c4   : > { %1072 = vmatprep.subr.bf16.mxu1 %v1262_v3 }
 0x1ca   : > { %1069 = vmatmul.mubr.msk.bf16.vlgmr.msra.gmra.mrb[0].mxu1 %vm482_vm1, %v489_v40 }
 0x1cb   : > { %1073 = vmatpush3.bf16.msra.mxu1 %v557_v43  ;;  %1074 = vmatprep.mubr.msk.bf16.mxu1 %vm1263_vm0, %v1262_v3  ;;  %v822_v43 = vld [vmem:[%s1600_s8] sm:$0xff] }
 0x1cc   : > { %1078 = vmatprep.subr.bf16.mxu1 %v1262_v3 }
 0x29d   : > { %v527_v46 = vpop.f32.mrb[0].mxu1 }
 0x29e   : > { %v534_v47 = vmul.f32 %v533_v45, %v527_v46  ;;  %v1070_v48 = vpop.f32.mrb[1].mxu1  ;;  %v824_v45 = vld [vmem:[%s1600_s8 + $0x10] sm:$0xff]  ;;  %v763_v46 = vsel %vm762_vm5, %v406_v32, 0.0 }
 0x29f   : > { %v530_v49 = vpop.f32.mrb[2].mxu1  ;;  %v825_v48 = vld [vmem:[%s1600_s8 + $0x18] sm:$0xff] }
 0x2a0   : > { %v1071_v50 = vpop.f32.mrb[3].mxu1  ;;  %v536_v51 = vsel %vm535_vm3, %v534_v47, -1e+30  ;;  %v830_v47 = vpack.c.bf16 %v823_v44, %v822_v43  ;;  %v831_v49 = vpack.c.bf16 %v825_v48, %v824_v45 }
 0x2a1   : > { %v538_v52 = vsel %vm537_vm4, %v536_v51, -inf  ;;  %v826_v50 = vld [vmem:[%s1600_s8 + $0x20] sm:$0xff] }
 0x2a2   : > { %539 = vmax.xlane.f32.xlu0 %v538_v52  ;;  %1103 = vmatpush3.bf16.msra.mxu0 %v830_v47 }
 0x2a3   : > { %1104 = vmatprep.subr.bf16.mxu0 %v1262_v3 }
 0x2a6   : > { %1105 = vmatpush3.bf16.msra.mxu0 %v831_v49 }
 0x2a7   : > { %1106 = vmatprep.subr.bf16.mxu0 %v1262_v3 }
 0x32f   : > { %v540_v53 = vpop.xlane.xlu0 %539 }
 0x330   : > { %v541_v54 = vsub.f32 %v536_v51, %v540_v53  ;;  %v827_v51 = vld [vmem:[%s1600_s8 + $0x28] sm:$0xff] }
 0x331   : > { %v832_v52 = vpack.c.bf16 %v827_v51, %v826_v50 }
 0x332   : > { %v542_v55 = vmul.f32 1.442695, %v541_v54 }
 0x333   : > { %1107 = vmatpush3.bf16.msra.mxu0 %v832_v52 }
 0x334   : > { %1168 = vpow2.f32 %v542_v55  ;;  %1108 = vmatprep.subr.bf16.mxu0 %v1262_v3 }
 0x33e   : > { %v1169_v56 = vpop.eup %1168 }
 0x33f   : > { %v544_v57 = vsel %vm537_vm4, %v1169_v56, 0.0 }
 0x340   : > { %545 = vadd.xlane.f32.xlu1 %v544_v57 }
 0x3cd   : > { %v546_v58 = vpop.xlane.xlu1 %545 }
 0x3ce   : > { %v547_v59 = vmax.f32 %v546_v58, 1e-20  ;;  %v828_v58 = vld [vmem:[%s1600_s8 + $0x30] sm:$0xff] }
 0x3d0   : > { %1170 = vrcp.f32 %v547_v59  ;;  %v829_v59 = vld [vmem:[%s1600_s8 + $0x38] sm:$0xff] }
 0x3da   : > { %v1171_v60 = vpop.eup %1170 }
 0x3db   : > { %v549_v61 = vmul.f32 %v1171_v60, %v1169_v56  ;;  %v833_v60 = vpack.c.bf16 %v829_v59, %v828_v58 }
 0x3dd   : > { %v550_v62 = vpack.c.bf16 %v549_v61, %v549_v61  ;;  %1109 = vmatpush3.bf16.msra.mxu0 %v833_v60 }
 0x3df   : > { %1075 = vmatmul.mubr.msk.bf16.vlgmr.msra.gmra.mrb[4].mxu1 %vm537_vm4, %v550_v62 }
 0x3e0   : > { %1080 = vmatprep.mubr.msk.bf16.mxu1 %vm1263_vm0, %v1262_v3 }
 0x4b2   : > { %v593_v63 = vpop.f32.mrb[4].mxu1 }
 0x4b3   : > { %v1076_v0 = vpop.f32.mrb[5].mxu1  ;;  %v600_v1 = vmul.f32 %v593_v63, %v593_v63  ;;  %v667_v12 = vpack.c.bf16 %v593_v63, %v593_v63 }
 0x4b4   : > { %v596_v2 = vpop.f32.mrb[6].mxu1 }
 0x4b5   : > { %v1077_v4 = vpop.f32.mrb[7].mxu1  ;;  %v601_v5 = vsel %vm482_vm1, %v600_v1, 0.0  ;;  %v672_v13 = vsel %vm555_vm2, %v667_v12, 0 }
 0x4b6   : > { %602 = vadd.xlane.f32.xlu1 %v601_v5 }
 0x543   : > { %v603_v6 = vpop.xlane.xlu1 %602 }
 0x544   : > { %v604_v7 = vmax.f32 %v603_v6, 1e-24  ;;  %v1014_v6 = vld [vmem:[%s1601_s9] ss:$0 sm:$0xff] }
 0x546   : > { %1172 = vrsqrt.f32 %v604_v7 }
 0x550   : > { %v1173_v8 = vpop.eup %1172 }
 0x551   : > { %v606_v9 = vmul.f32 %v1173_v8, %v593_v63 }
 0x553   : > { %v607_v10 = vpack.c.bf16 %v606_v9, %v606_v9 }
 0x555   : > { %v609_v11 = vsel %vm482_vm1, %v607_v10, 0 }
 0x556   : > { %1079 = vmatpush3.bf16.xpose.msra.mxu1 %v609_v11 }
 0x557   : > { %1084 = vmatprep.subr.bf16.mxu1 %v1262_v3 }
 0x55d   : > { %1081 = vmatmul.mubr.msk.bf16.vlgmr.msra.gmra.mrb[8].mxu1 %vm482_vm1, %v607_v10 }
 0x55e   : > { %1085 = vmatpush3.bf16.msra.mxu1 %v672_v13  ;;  %1086 = vmatprep.mubr.msk.bf16.mxu1 %vm1263_vm0, %v1262_v3 }
 0x55f   : > { %1090 = vmatprep.subr.bf16.mxu1 %v1262_v3 }
 0x630   : > { %v645_v15 = vpop.f32.mrb[8].mxu1 }
 0x631   : > { %v652_v16 = vmul.f32 %v651_v14, %v645_v15  ;;  %v1082_v17 = vpop.f32.mrb[9].mxu1 }
 0x632   : > { %v648_v18 = vpop.f32.mrb[10].mxu1 }
 0x633   : > { %v1083_v19 = vpop.f32.mrb[11].mxu1  ;;  %v653_v20 = vsel %vm535_vm3, %v652_v16, -1e+30 }
 0x634   : > { %v654_v21 = vsel %vm537_vm4, %v653_v20, -inf }
 0x635   : > { %655 = vmax.xlane.f32.xlu0 %v654_v21 }
 0x639   : > { %764 = vadd.xlane.f32.xlu0 %v763_v46 }
 0x6c2   : > { %v656_v22 = vpop.xlane.xlu0 %655 }
 0x6c3   : > { %v657_v23 = vsub.f32 %v653_v20, %v656_v22 }
 0x6c5   : > { %v658_v24 = vmul.f32 1.442695, %v657_v23 }
 0x6c6   : > { %v765_v61 = vpop.xlane.xlu0 %764 }
 0x6c7   : > { %1174 = vpow2.f32 %v658_v24 }
 0x6d1   : > { %v1175_v25 = vpop.eup %1174 }
 0x6d2   : > { %v660_v26 = vsel %vm537_vm4, %v1175_v25, 0.0 }
 0x6d3   : > { %661 = vadd.xlane.f32.xlu1 %v660_v26 }
 0x760   : > { %v662_v27 = vpop.xlane.xlu1 %661 }
 0x761   : > { %v663_v28 = vmax.f32 %v662_v27, 1e-20 }
 0x763   : > { %1176 = vrcp.f32 %v663_v28 }
 0x76d   : > { %v1177_v29 = vpop.eup %1176 }
 0x76e   : > { %v665_v30 = vmul.f32 %v1177_v29, %v1175_v25 }
 0x770   : > { %v666_v31 = vpack.c.bf16 %v665_v30, %v665_v30 }
 0x772   : > { %1087 = vmatmul.mubr.msk.bf16.vlgmr.msra.gmra.mrb[12].mxu1 %vm537_vm4, %v666_v31 }
 0x773   : > { %1092 = vmatprep.mubr.msk.bf16.mxu1 %vm1263_vm0, %v1262_v3 }
 0x845   : > { %v708_v33 = vpop.f32.mrb[12].mxu1 }
 0x846   : > { %v715_v34 = vpack.c.bf16 %v708_v33, %v708_v33  ;;  %v1088_v35 = vpop.f32.mrb[13].mxu1 }
 0x847   : > { %v711_v38 = vpop.f32.mrb[14].mxu1 }
 0x848   : > { %v720_v40 = vsel %vm555_vm2, %v715_v34, 0  ;;  %v1089_v41 = vpop.f32.mrb[15].mxu1 }
 0x849   : > { %1091 = vmatpush3.bf16.msra.mxu1 %v720_v40 }
 0x84a   : > { %1096 = vmatprep.subr.bf16.mxu1 %v1262_v3 }
 0x84c   : > { %1093 = vmatmul.mubr.msk.bf16.vlgmr.msra.gmra.mrb[16].mxu1 %vm537_vm4, %v714_v39 }
 0x84d   : > { %1097 = vmatpush3.bf16.msra.mxu1 %v769_v42  ;;  %1098 = vmatprep.mubr.msk.bf16.mxu1 %vm1263_vm0, %v1262_v3  ;;  %v1012_v3 = vld [vmem:[%s1599_s7] ss:$0 sm:$0xff] }
 0x84e   : > { %v777_v62 = vmul.f32 %v1012_v3, %v765_v61 }
 0x91f   : > { %v756_v53 = vpop.f32.mrb[16].mxu1 }
 0x920   : > { %v766_v54 = vpack.c.bf16 %v756_v53, %v756_v53  ;;  %v1094_v55 = vpop.f32.mrb[17].mxu1 }
 0x921   : > { %v759_v56 = vpop.f32.mrb[18].mxu1 }
 0x922   : > { %v1095_v57 = vpop.f32.mrb[19].mxu1  ;;  %1099 = vmatmul.mubr.msk.bf16.vlgmr.msra.gmra.mrb[20].mxu1 %vm482_vm1, %v766_v54 }
 0x9f5   : > { %v815_v63 = vpop.f32.mrb[20].mxu1 }
 0x9f6   : > { %v816_v0 = vadd.f32 %v815_v63, %v777_v62  ;;  %v1100_v1 = vpop.f32.mrb[21].mxu1 }
 0x9f7   : > { %v818_v2 = vpop.f32.mrb[22].mxu1 }
 0x9f8   : > { %v821_v4 = vpack.c.bf16 %v816_v0, %v816_v0  ;;  %v1101_v5 = vpop.f32.mrb[23].mxu1 }
 0x9fa   : > { %1111 = vmatmul.mubr.msk.bf16.vlgmr.msra.gmra.mrb[4].mxu0 %vm841_vm6, %v821_v4 }
 0xacd   : > { %v879_v7 = vpop.f32.mrb[4].mxu0 }
 0xace   : > { %v880_v8 = vadd.f32 %v1014_v6, %v879_v7  ;;  %v1112_v9 = vpop.f32.mrb[5].mxu0 }
 0xacf   : > { %v882_v10 = vpop.f32.mrb[6].mxu0 }
 0xad0   : > { %885 = vst [vmem:[%s390_s11] sm:$0x3] %v880_v8  ;;  %v1113_v11 = vpop.f32.mrb[7].mxu0 }
 0xad1   : > { %1206 = shalt.err (!%p1203_p2)
}
 0xad2   : > { %s1207_s25 = scalar_lea.hbm %s1550_s21, 32  ;;  %s1211_s12 = scalar_lea.hbm %s1602_s10, 64 }
 0xad3   : > { %p1208_p3 = scmp.ne.s32.totalorder %s1550_s21, %s1207_s25  ;;  %p1212_p8 = scmp.lt.u32.totalorder %s1550_s21, %s1602_s10 }
 0xad4   : > { %p1213_p9 = scmp.lt.u32.totalorder %s1211_s12, %s1207_s25  ;;  %p1215_p11 = scmp.lt.u32.totalorder %s1207_s25, %s1550_s21 }
 0xad5   : > { %p1209_p4 = pnand %p1208_p3, %p1358_p5 }
 0xad6   : > { %p1214_p10 = por %p1213_p9, %p1212_p8 }
 0xad7   : > { %p1210_p7 = pneg %p1209_p4 }
 0xad8   : > { %p1216_p12 = por %p1215_p11, %p1214_p10 }
 0xada   : > { %p1217_p13 = pnand %p1216_p12, %p1210_p7 }
 0xadc   : > { %1220 = shalt.err (!%p1217_p13)
}
 0xadd   : > { %1118 = dma.vmem_to_hbm [thread:$0]  (%p1358_p5), %s1552_s27, 32, %s1550_s21, %s887_s26  }
 0xade PF: > { %p1130_p0 = scmp.ge.s32.totalorder %s1259_s16, 2  ;;  %s912_s17 = sand.u32 1, %s1247_s13  }
 0xadf   : > { %s913_s29 = scalar_lea.sflag [#allocation3], %s912_s17 }
 0xae0   : > { %p1125_p1 = pnand %p1130_p0, %p1362_p6 }
 0xae2   : > { %1242 = dma.done.wait (!%p1125_p1), %s913_s29, 32  }
 0xae3   : > { %1244 = vsyncadd (!%p1125_p1), %s913_s29, 4294967264  ;;  %p21_p2 = scmp.ge.s32.totalorder %s1345_s19, 4   ;;  %s1606_s13 = smov %s1251_s14 }
 0xae4   : > { %s1607_s14 = smov %s1255_s15  ;;  %s1608_s15 = smov %s1356_s22 }
 0xae5   : > { %s1609_s16 = smov %s1345_s19  ;;  %23 = sbr.rel (!%p21_p2) target bundleno = 4 (0x4), region = 106 }
 0xaec   :  { %918 = vsyncpa [#allocation3], 1 }
 0xaed   :  { %920 = vsyncpa [#allocation3 + $0x1], 1 }
 0xaee   :  { %921 = vsyncpa [#allocation4], 1 }
 0xaef   :  { %923 = vsyncpa [#allocation4 + $0x1], 1 }

</bundles_post_ra>
